<compile_context>
chip_gen: v7x
topology: tpu7x:2x2x1
jax: 0.10.0
libtpu: 0.0.40
codegen_flags: <defaults>
</compile_context>

<pallas_src>
import math

import jax
import jax.numpy as jnp
from jax import lax
from jax.experimental import pallas as pl
from jax.experimental.pallas import tpu as pltpu


def _round_up(x, m):
    return ((x + m - 1) // m) * m


def _time2vec_kernel(t_ref, w_ref, b_ref, m_ref, o_ref):
    # t_ref: (R, P)        packed time values
    # w_ref: (P, P*D)      block-diagonal weights ([w0, W] on the diag blocks)
    # b_ref: (1, P*D)      [b0, B] tiled P times
    # m_ref: (1, P*D)      int32 mask, 1 on the "linear" lane of each group
    # o_ref: (R, P*D)      lane-dense output
    t = t_ref[...]
    # Lane-dense expansion + scale in one MXU op:
    #   lin[r, p*D + j] = t[r, p] * w_full[j] + b_full[j]
    lin = jnp.dot(t, w_ref[...],
                  preferred_element_type=jnp.float32,
                  precision=lax.Precision.HIGHEST) + b_ref[...]
    is_lin = jnp.broadcast_to(m_ref[...], lin.shape) != 0
    o_ref[...] = jnp.where(is_lin, lin, jnp.sin(lin)).astype(o_ref.dtype)


def time2vec(t, w0, b0, W, B, *, block_rows=None):
    """t: (batch, seq) float. Returns (batch, seq, d_model) float32."""
    d_model = W.shape[0] + 1
    bsz, seq = t.shape
    n = bsz * seq

    # Lane packing factor: dp = packing * d_model is a multiple of 128 when
    # feasible, so output stores are unmasked and full-width.
    packing = 128 // math.gcd(d_model, 128)
    if d_model >= 128 or packing * packing * d_model * 4 > (1 << 20):
        packing = 1  # fall back (large / awkward d_model); still correct.
    dp = packing * d_model

    rows = pl.cdiv(n, packing)                        # packed rows needed
    if block_rows is None:
        # ~2 MiB f32 output tile per grid step, multiple of 8 sublanes.
        block_rows = max(8, ((2 * 1024 * 1024) // (dp * 4)) // 8 * 8)
    row_block = min(block_rows, _round_up(rows, 8))
    rows_padded = _round_up(rows, row_block)

    # Pad the tiny 1-value-per-row input so arbitrary B*S works with big tiles.
    t_flat = t.reshape(-1).astype(jnp.float32)
    pad = rows_padded * packing - n
    if pad:
        t_flat = jnp.pad(t_flat, (0, pad))
    t2d = t_flat.reshape(rows_padded, packing)

    w_full = jnp.concatenate([w0, W]).astype(jnp.float32).reshape(1, d_model)
    b_full = jnp.concatenate([b0, B]).astype(jnp.float32).reshape(1, d_model)
    # Block-diagonal weights: w_mat[p, p*d_model + j] = w_full[j]
    w_mat = jnp.kron(jnp.eye(packing, dtype=jnp.float32), w_full)    # (P, dp)
    b_packed = jnp.tile(b_full, (1, packing))                        # (1, dp)
    mask = (jnp.arange(dp, dtype=jnp.int32) % d_model == 0)
    mask = mask.astype(jnp.int32).reshape(1, dp)                     # (1, dp)

    grid = (rows_padded // row_block,)

    cost = pl.CostEstimate(
        flops=2 * rows_padded * packing * dp + 2 * rows_padded * dp,
        transcendentals=rows_padded * dp,
        bytes_accessed=4 * (rows_padded * packing          # t in
                            + rows_padded * dp             # out
                            + packing * dp + 2 * dp),      # params + mask
    )

    out = pl.pallas_call(
        _time2vec_kernel,
        out_shape=jax.ShapeDtypeStruct((rows_padded, dp), jnp.float32),
        grid_spec=pltpu.PrefetchScalarGridSpec(
            num_scalar_prefetch=0,
            grid=grid,
            in_specs=[
                pl.BlockSpec((row_block, packing), lambda i: (i, 0)),
                pl.BlockSpec((packing, dp), lambda i: (0, 0)),
                pl.BlockSpec((1, dp), lambda i: (0, 0)),
                pl.BlockSpec((1, dp), lambda i: (0, 0)),
            ],
            out_specs=pl.BlockSpec((row_block, dp), lambda i: (i, 0)),
        ),
        compiler_params=pltpu.CompilerParams(
            dimension_semantics=("parallel",)),
        cost_estimate=cost,
    )(t2d, w_mat, b_packed, mask)

    # (rows_padded, P*D) is row-major identical to (rows_padded*P, D).
    out = out.reshape(rows_padded * packing, d_model)[:n]
    return out.reshape(bsz, seq, d_model)


def time2vec_ref(t, w0, b0, W, B):
    # Pure-JAX reference of the PyTorch forward.
    t = t[..., None]
    v1 = w0 * t + b0
    v2 = jnp.sin(t * W + B)
    return jnp.concatenate([v1, v2], axis=-1)


def _make_params(key, d_model):
    k_w0, k_b0, k_W, k_B = jax.random.split(key, 4)
    # Module inits params to zeros; use random values so the test is non-trivial.
    w0 = jax.random.normal(k_w0, (1,), dtype=jnp.float32)
    b0 = jax.random.normal(k_b0, (1,), dtype=jnp.float32)
    W = jax.random.normal(k_W, (d_model - 1,), dtype=jnp.float32)
    B = jax.random.normal(k_B, (d_model - 1,), dtype=jnp.float32)
    return w0, b0, W, B


if __name__ == "__main__":
    key = jax.random.PRNGKey(0)
    k_t, k_p1, k_p2 = jax.random.split(key, 3)

    # Case 1: d_model = 32 (divides 128), even B*S.
    d_model = 32
    w0, b0, W, B = _make_params(k_p1, d_model)
    t = jax.random.normal(k_t, (2, 8), dtype=jnp.float32)
    out = jax.block_until_ready(time2vec(t, w0, b0, W, B))
    ref = time2vec_ref(t, w0, b0, W, B)
    assert out.shape == (2, 8, d_model)
    assert jnp.allclose(out, ref, atol=1e-5, rtol=1e-5), "mismatch (even case)"

    # Case 2: ragged B*S exercising the padding path.
    t2 = jax.random.normal(k_t, (3, 5), dtype=jnp.float32)
    out2 = jax.block_until_ready(time2vec(t2, w0, b0, W, B))
    ref2 = time2vec_ref(t2, w0, b0, W, B)
    assert out2.shape == (3, 5, d_model)
    assert jnp.allclose(out2, ref2, atol=1e-5, rtol=1e-5), "mismatch (ragged case)"

    # Case 3: d_model = 24 (non power of two) exercising gcd packing + mask path.
    d_model3 = 24
    w0c, b0c, Wc, Bc = _make_params(k_p2, d_model3)
    t3 = jax.random.normal(k_t, (3, 5), dtype=jnp.float32)
    out3 = jax.block_until_ready(time2vec(t3, w0c, b0c, Wc, Bc))
    ref3 = time2vec_ref(t3, w0c, b0c, Wc, Bc)
    assert out3.shape == (3, 5, d_model3)
    assert jnp.allclose(out3, ref3, atol=1e-5, rtol=1e-5), "mismatch (d_model=24)"

    print("KERNEL_OK")
</pallas_src>

<mosaic_0001>
module attributes {stable_mosaic.version = 11 : i64} {
  func.func @_time2vec_kernel(%arg0: i32, %arg1: memref<8x4xf32, #tpu.memory_space<vmem>>, %arg2: memref<4x128xf32, #tpu.memory_space<vmem>>, %arg3: memref<1x128xf32, #tpu.memory_space<vmem>>, %arg4: memref<1x128xi32, #tpu.memory_space<vmem>>, %arg5: memref<8x128xf32, #tpu.memory_space<vmem>>) attributes {dimension_semantics = [#tpu.dimension_semantics<parallel>], iteration_bounds = array<i64: 1>, scalar_prefetch = 0 : i64, scratch_operands = 0 : i64, tpu.core_type = #tpu.core_type<tc>, window_params = [{transform_indices = @transform_0, window_bounds = array<i64: 8, 4>}, {pipeline_mode = #tpu.pipeline_mode<synchronous>, transform_indices = @transform_1, window_bounds = array<i64: 4, 128>}, {pipeline_mode = #tpu.pipeline_mode<synchronous>, transform_indices = @transform_2, window_bounds = array<i64: 1, 128>}, {pipeline_mode = #tpu.pipeline_mode<synchronous>, transform_indices = @transform_3, window_bounds = array<i64: 1, 128>}, {transform_indices = @transform_4, window_bounds = array<i64: 8, 128>}]} {
    %c0 = arith.constant 0 : index
    %c0_0 = arith.constant 0 : index
    %0 = vector.load %arg1[%c0, %c0_0] : memref<8x4xf32, #tpu.memory_space<vmem>>, vector<8x4xf32>
    %c0_1 = arith.constant 0 : index
    %c0_2 = arith.constant 0 : index
    %1 = vector.load %arg2[%c0_1, %c0_2] : memref<4x128xf32, #tpu.memory_space<vmem>>, vector<4x128xf32>
    %cst = arith.constant dense<0.000000e+00> : vector<8x128xf32>
    %2 = tpu.matmul %0, %1, %cst {dimension_numbers = #tpu.dot_dimension_numbers<[1], [0], [0], [1], [0, 0, 1, 1], [], []>, precision = #tpu.contract_precision<fp32>} : vector<8x4xf32>, vector<4x128xf32>, vector<8x128xf32> -> vector<8x128xf32>
    %c0_3 = arith.constant 0 : index
    %c0_4 = arith.constant 0 : index
    %3 = vector.load %arg3[%c0_3, %c0_4] : memref<1x128xf32, #tpu.memory_space<vmem>>, vector<1x128xf32>
    %4 = vector.broadcast %3 : vector<1x128xf32> to vector<8x128xf32>
    %5 = arith.addf %2, %4 : vector<8x128xf32>
    %c0_5 = arith.constant 0 : index
    %c0_6 = arith.constant 0 : index
    %6 = vector.load %arg4[%c0_5, %c0_6] : memref<1x128xi32, #tpu.memory_space<vmem>>, vector<1x128xi32>
    %7 = vector.shape_cast %6 : vector<1x128xi32> to vector<1x128xi32>
    %8 = vector.broadcast %7 : vector<1x128xi32> to vector<8x128xi32>
    %c0_i32 = arith.constant 0 : i32
    %9 = vector.broadcast %c0_i32 : i32 to vector<8x128xi32>
    %10 = arith.cmpi ne, %8, %9 : vector<8x128xi32>
    %11 = math.sin %5 : vector<8x128xf32>
    %12 = arith.select %10, %5, %11 : vector<8x128xi1>, vector<8x128xf32>
    %c0_7 = arith.constant 0 : index
    %c0_8 = arith.constant 0 : index
    %13 = vector.load %arg5[%c0_7, %c0_8] : memref<8x128xf32, #tpu.memory_space<vmem>>, vector<8x128xf32>
    tpu.vector_store %arg5[%c0_7, %c0_8], %12 {strides = array<i32>} : memref<8x128xf32, #tpu.memory_space<vmem>>, vector<8x128xf32>,
    return
  }
  func.func @transform_0(%arg0: i32) -> (i32, i32) {
    %c0_i32 = arith.constant 0 : i32
    %c0_i32_0 = arith.constant 0 : i32
    return %arg0, %c0_i32 : i32, i32
  }
  func.func @transform_1(%arg0: i32) -> (i32, i32) {
    %c0_i32 = arith.constant 0 : i32
    %c0_i32_0 = arith.constant 0 : i32
    %c0_i32_1 = arith.constant 0 : i32
    return %c0_i32, %c0_i32_0 : i32, i32
  }
  func.func @transform_2(%arg0: i32) -> (i32, i32) {
    %c0_i32 = arith.constant 0 : i32
    %c0_i32_0 = arith.constant 0 : i32
    %c0_i32_1 = arith.constant 0 : i32
    return %c0_i32, %c0_i32_0 : i32, i32
  }
  func.func @transform_3(%arg0: i32) -> (i32, i32) {
    %c0_i32 = arith.constant 0 : i32
    %c0_i32_0 = arith.constant 0 : i32
    %c0_i32_1 = arith.constant 0 : i32
    return %c0_i32, %c0_i32_0 : i32, i32
  }
  func.func @transform_4(%arg0: i32) -> (i32, i32) {
    %c0_i32 = arith.constant 0 : i32
    %c0_i32_0 = arith.constant 0 : i32
    return %arg0, %c0_i32 : i32, i32
  }
}

</mosaic_0001>

<bundles_post_ra>
// kernel: tpu_custom_call.1
= control target key start
LH: loop header
LB: loop body
LE: loop exit
PB: predicated region body
PF: predicated region fallthrough
CT: control target
= control target key end

     0   :  { %vm31_vm0 = vcmask 1043456   ;;  %v706_v2 = vmov 0.0   ;;  %vm707_vm1 = vmmov 0   ;;  %vm27_vm2 = vcmask 31744   ;;  %s792_s0 = inlined_call_operand.vmem [shape: f32[8,4], index: 0, kind: input, shape index: {}]   ;;  %s793_s1 = inlined_call_operand.vmem [shape: f32[4,128], index: 1, kind: input, shape index: {}]   ;;  %s794_s2 = inlined_call_operand.vmem [shape: f32[1,128], index: 2, kind: input, shape index: {}]   ;;  %s795_s3 = inlined_call_operand.vmem [shape: s32[1,128], index: 3, kind: input, shape index: {}]   ;;  %s796_s4 = inlined_call_operand.hbm [shape: f32[8,128], index: 4, kind: output, shape index: {}]  }
   0x1   :  { %v19_v0 = vld [vmem:[%s793_s1] sm:$0xf]  ;;  %640 = vmatprep.subr.mxu0 %v706_v2  ;;  %642 = vmatprep.mubr.msk.f32.mxu0 %vm707_vm1, %v706_v2 }
   0x2   :  { %v18_v1 = vld [vmem:[%s792_s0] sm:$0xff]  ;;  %v33_v3 = vsel %vm31_vm0, %v19_v0, 0 }
   0x3   :  { %9 = vsyncpa [#allocation3], 0  ;;  %v36_v4 = vand.u32 4294901760, %v33_v3  ;;  %v29_v5 = vsel %vm27_vm2, %v18_v1, 0  ;;  %625 = vmatprep.subr.mxu1 %v706_v2  ;;  %627 = vmatprep.mubr.msk.f32.mxu1 %vm707_vm1, %v706_v2  ;;  %v607_v17 = vld [vmem:[%s794_s2] ss:$0 sm:$0xff] }
   0x4   :  { %v101_v6 = vand.u32 4294901760, %v29_v5  ;;  %v708_v32 = vmov 683565275   ;;  %v709_v34 = vmov 2475754826   ;;  %s714_s20 = smov [#allocation2]  }
   0x5   :  { %v113_v7 = vsub.f32 %v33_v3, %v36_v4  ;;  %641 = vmatpush3.msra.mxu0 %v36_v4  ;;  %626 = vmatpush3.msra.mxu1 %v36_v4  ;;  %v710_v37 = vmov 2131351028   ;;  %v711_v40 = vmov 2102212464   ;;  %v712_v43 = vmov 920167782  }
   0x6   :  { %v102_v8 = vsub.f32 %v29_v5, %v101_v6  ;;  %630 = vmatprep.subr.mxu1 %v706_v2  ;;  %645 = vmatprep.subr.mxu0 %v706_v2  ;;  %v713_v46 = vmov 1326507024   ;;  %s599_s21 = sshll.u32 %s714_s20, 4  ;;  %s600_s21 = int_to_ptr.vmem [resolvable:$true] %s599_s21 }
   0x7   :  { %v114_v9 = vand.u32 4294901760, %v113_v7  ;;  %s682_s22 = scalar_lea.vmem %s600_s21, 128  ;;  %p687_p1 = scmp.lt.s32.totalorder %s600_s21, %s600_s21 }
   0x8   :  { %v103_v10 = vand.u32 4294901760, %v102_v8  ;;  %p683_p0 = scmp.ne.s32.totalorder %s600_s21, %s682_s22  ;;  %p688_p2 = scmp.lt.s32.totalorder %s682_s22, %s682_s22 }
   0x9   :  { %v115_v11 = vsub.f32 %v113_v7, %v114_v9 }
   0xa   :  { %643 = vmatmul.mubr.f32.vlgmr.msra.gmra.mrb[0].mxu0 %v103_v10  ;;  %v104_v12 = vsub.f32 %v102_v8, %v103_v10  ;;  %p689_p3 = por %p688_p2, %p687_p1 }
   0xb   :  { %v116_v13 = vand.u32 4294901760, %v115_v11  ;;  %646 = vmatpush3.msra.mxu0 %v114_v9  ;;  %647 = vmatprep.mubr.msk.f32.mxu0 %vm707_vm1, %v706_v2 }
   0xc   :  { %v105_v14 = vand.u32 4294901760, %v104_v12  ;;  %650 = vmatprep.subr.mxu0 %v706_v2  ;;  %p690_p4 = pnand %p689_p3, %p683_p0 }
   0xe   :  { %628 = vmatmul.mubr.f32.vlgmr.msra.gmra.mrb[0].mxu1 %v105_v14 }
   0xf   :  { %631 = vmatpush3.msra.mxu1 %v116_v13  ;;  %632 = vmatprep.mubr.msk.f32.mxu1 %vm707_vm1, %v706_v2 }
  0x10   :  { %635 = vmatprep.subr.mxu1 %v706_v2 }
  0x12   :  { %648 = vmatmul.mubr.f32.vlgmr.msra.gmra.mrb[0].mxu0 %v101_v6 }
  0x13   :  { %651 = vmatpush3.msra.mxu0 %v36_v4  ;;  %652 = vmatprep.mubr.msk.f32.mxu0 %vm707_vm1, %v706_v2 }
  0x16   :  { %633 = vmatmul.mubr.f32.vlgmr.msra.gmra.mrb[0].mxu1 %v101_v6 }
  0x17   :  { %636 = vmatpush3.msra.mxu1 %v113_v7  ;;  %637 = vmatprep.mubr.msk.f32.mxu1 %vm707_vm1, %v706_v2 }
  0x1a   :  { %653 = vmatmul.mubr.f32.vlgmr.msra.gmra.mrb[0].mxu0 %v101_v6 }
  0x1e   :  { %638 = vmatmul.mubr.f32.vlgmr.msra.gmra.mrb[0].mxu1 %v102_v8 }
  0xed   :  { %v477_v15 = vpop.f32.mrb[0].mxu0 }
  0xee   :  { %v654_v16 = vpop.f32.mrb[1].mxu0 }
  0xf1   :  { %v257_v18 = vpop.f32.mrb[0].mxu1 }
  0xf2   :  { %v655_v19 = vadd.f32 %v607_v17, %v257_v18  ;;  %v639_v20 = vpop.f32.mrb[1].mxu1 }
  0xf4   :  { %v755_v21 = vadd.f32 %v655_v19, %v477_v15 }
  0xf6   :  { %v490_v22 = vand.u32 2139095040, %v755_v21  ;;  %v487_v26 = vand.u32 2147483647, %v755_v21  ;;  %vm489_vm10 = vcmp.lt.s32.totalorder %v755_v21, 0  ;;  %vm579_vm0 = vweird.f32 %v755_v21 }
  0xf8   :  { %v491_v23 = vshrl.u32 %v490_v22, 23  ;;  %v494_v30 = vand.u32 8388607, %v487_v26  ;;  %vm488_vm11 = vcmp.le.f32.partialorder %v487_v26, 0.7853982 }
  0xfa   :  { %v609_v24 = vadd.s32 4294967169, %v491_v23  ;;  %v495_v48 = vor.u32 8388608, %v494_v30 }
  0xfc   :  { %v497_v25 = vadd.s32 1, %v609_v24  ;;  %v535_v62 = vshll.u32 %v495_v48, 8 }
  0xfe   :  { %vm498_vm3 = vcmp.gt.s32.totalorder %v497_v25, 0 }
  0xff   :  { %v499_v27 = vsel %vm498_vm3, %v497_v25, 0 }
 0x100   :  { %v501_v28 = vand.u32 31, %v499_v27  ;;  %v500_v31 = vshrl.u32 %v499_v27, 5 }
 0x102   :  { %v502_v29 = vsub.s32 32, %v501_v28  ;;  %v504_v33 = vshll.u32 %v708_v32, %v501_v28  ;;  %v507_v35 = vshll.u32 %v709_v34, %v501_v28  ;;  %v510_v39 = vshll.u32 %v710_v37, %v501_v28 }
 0x103   :  { %v513_v42 = vshll.u32 %v711_v40, %v501_v28  ;;  %v516_v45 = vshll.u32 %v712_v43, %v501_v28  ;;  %vm519_vm4 = vcmp.lt.s32.totalorder %v500_v31, 1  ;;  %vm522_vm5 = vcmp.lt.s32.totalorder %v500_v31, 4 }
 0x104   :  { %v505_v36 = vshrl.u32 %v709_v34, %v502_v29  ;;  %v508_v38 = vshrl.u32 %v710_v37, %v502_v29  ;;  %v511_v41 = vshrl.u32 %v711_v40, %v502_v29  ;;  %v514_v44 = vshrl.u32 %v712_v43, %v502_v29 }
 0x105   :  { %v517_v47 = vshrl.u32 %v713_v46, %v502_v29  ;;  %v503_v57 = vshrl.u32 %v708_v32, %v502_v29  ;;  %vm521_vm6 = vcmp.lt.s32.totalorder %v500_v31, 3  ;;  %vm520_vm7 = vcmp.lt.s32.totalorder %v500_v31, 2 }
 0x106   :  { %v506_v49 = vor.u32 %v505_v36, %v504_v33  ;;  %v509_v50 = vor.u32 %v508_v38, %v507_v35  ;;  %v512_v51 = vor.u32 %v511_v41, %v510_v39  ;;  %v515_v52 = vor.u32 %v514_v44, %v513_v42 }
 0x107   :  { %v518_v53 = vor.u32 %v517_v47, %v516_v45  ;;  %v608_v45 = vld [vmem:[%s795_s3] ss:$0 sm:$0xff] }
 0x108   :  { %v524_v54 = vsel %vm522_vm5, %v512_v51, 2102212464  ;;  %v527_v55 = vsel %vm519_vm4, %v506_v49, %v509_v50  ;;  %v531_v56 = vsel %vm519_vm4, %v509_v50, %v512_v51  ;;  %v528_v58 = vsel %vm522_vm5, %v515_v52, 920167782 }
 0x109   :  { %v532_v59 = vsel %vm522_vm5, %v518_v53, 1326507024  ;;  %v529_v60 = vsel %vm521_vm6, %v512_v51, %v528_v58  ;;  %v523_v63 = vsel %vm519_vm4, %v503_v57, %v506_v49  ;;  %v525_v0 = vsel %vm521_vm6, %v509_v50, %v524_v54 }
 0x10a   :  { %v533_v61 = vsel %vm521_vm6, %v515_v52, %v532_v59  ;;  %v530_v1 = vsel %vm520_vm7, %v527_v55, %v529_v60  ;;  %v526_v7 = vsel %vm520_vm7, %v523_v63, %v525_v0  ;;  %vm486_vm14 = vcmp.ne.s32.totalorder %v608_v45, 0 }
 0x10b   :  { %v534_v2 = vsel %vm520_vm7, %v531_v56, %v533_v61  ;;  %v764_v5 = vmul.u32.u64.low %v535_v62, %v530_v1  ;;  %v765_v6 = vmul.u32.u64.high %v535_v62, %v530_v1, %v764_v5  ;;  %v542_v9 = vmul.u32 %v535_v62, %v526_v7 }
 0x10c   :  { %v761_v3 = vmul.u32.u64.low %v535_v62, %v534_v2  ;;  %v762_v4 = vmul.u32.u64.high %v535_v62, %v534_v2, %v761_v3 }
 0x10d   :  { %v545_v8 = vadd.s32 1, %v765_v6 }
 0x10e   :  { %vm544_vm8 = vc.u32 %v762_v4, %v764_v5  ;;  %v543_v22 = vadd.s32 %v764_v5, %v762_v4 }
 0x10f   :  { %v546_v10 = vsel %vm544_vm8, %v545_v8, %v765_v6 }
 0x110   :  { %v547_v11 = vadd.s32 %v546_v10, %v542_v9 }
 0x112   :  { %v548_v12 = vadd.s32 536870912, %v547_v11 }
 0x114   :  { %v549_v13 = vshrl.u32 %v548_v12, 30 }
 0x116   :  { %v550_v14 = vshll.u32 %v549_v13, 30  ;;  %v573_v35 = vsub.s32 4, %v549_v13 }
 0x118   :  { %v551_v15 = vsub.s32 %v547_v11, %v550_v14  ;;  %v574_v38 = vsel %vm489_vm10, %v573_v35, %v549_v13 }
 0x119   :  { %v576_v40 = vsel %vm488_vm11, 0, %v574_v38 }
 0x11a   :  { %v553_v16 = vsub.s32 0, %v551_v15  ;;  %v580_v41 = vadd.s32 3, %v576_v40 }
 0x11c   :  { %v610_v17 = vmin.u32 %v553_v16, %v551_v15  ;;  %v581_v42 = vand.u32 3, %v580_v41 }
 0x11e   :  { %v555_v18 = vclz %v610_v17  ;;  %vm586_vm12 = vcmp.eq.s32.totalorder %v581_v42, 2  ;;  %vm583_vm13 = vcmp.eq.s32.totalorder %v581_v42, 0  ;;  %vm582_vm15 = vcmp.lt.s32.totalorder %v581_v42, 2 }
 0x120   :  { %v611_v19 = vadd.s32 4294967294, %v555_v18 }
 0x122   :  { %vm612_vm9 = vcmp.lt.s32.totalorder %v611_v19, 0 }
 0x123   :  { %v558_v20 = vsel %vm612_vm9, 0, %v611_v19 }
 0x124   :  { %v559_v23 = vsub.s32 32, %v558_v20  ;;  %v563_v24 = vsub.s32 4294967266, %v558_v20  ;;  %v560_v25 = vshll.u32 %v551_v15, %v558_v20 }
 0x126   :  { %v561_v27 = vshrl.u32 %v543_v22, %v559_v23  ;;  %v564_v28 = vadd.s32 127, %v563_v24 }
 0x128   :  { %v562_v29 = vor.u32 %v561_v27, %v560_v25  ;;  %v565_v30 = vshll.u32 %v564_v28, 23 }
 0x12a   :  { %v566_v31 = vor.u32 4788187, %v565_v30  ;;  %v569_v33 = vcvt.s32.f32 %v562_v29 }
 0x12c   :  { %v567_v32 = vand.u32 2147483647, %v566_v31 }
 0x12e   :  { %v570_v34 = vmul.f32 %v569_v33, %v567_v32 }
 0x130   :  { %v571_v36 = vxor.u32 2147483648, %v570_v34 }
 0x132   :  { %v572_v37 = vsel %vm489_vm10, %v571_v36, %v570_v34 }
 0x133   :  { %v575_v39 = vsel %vm488_vm11, %v755_v21, %v572_v37 }
 0x134   :  { %678 = vcosq.f32 %v575_v39 }
 0x135   :  { %680 = vsinq.f32 %v575_v39 }
 0x13e   :  { %v679_v43 = vpop.eup %678 }
 0x13f   :  { %v681_v44 = vpop.eup %680  ;;  %v587_v46 = vxor.u32 2147483648, %v679_v43 }
 0x140   :  { %v584_v47 = vxor.u32 2147483648, %v681_v44 }
 0x141   :  { %v588_v26 = vsel %vm586_vm12, %v587_v46, %v681_v44 }
 0x142   :  { %v585_v48 = vsel %vm583_vm13, %v679_v43, %v584_v47 }
 0x143   :  { %v589_v49 = vsel %vm582_vm15, %v585_v48, %v588_v26 }
 0x144   :  { %v590_v50 = vsel %vm579_vm0, nan, %v589_v49 }
 0x145   :  { %v591_v51 = vsel %vm486_vm14, %v755_v21, %v590_v50 }
 0x146   :  { %592 = vst [vmem:[#allocation2] sm:$0xff] %v591_v51 }
 0x147   :  { %693 = shalt.err (!%p690_p4)
}
 0x148   :  { %s694_s24 = scalar_lea.hbm %s796_s4, 128 }
 0x149   :  { %p695_p5 = scmp.ne.s32.totalorder %s796_s4, %s694_s24  ;;  %p698_p6 = scmp.lt.u32.totalorder %s694_s24, %s796_s4 }
 0x14b   :  { %p700_p7 = pnand %p698_p6, %p695_p5 }
 0x14d   :  { %703 = shalt.err (!%p700_p7)
}
 0x14e   :  { %602 = dma.vmem_to_hbm [thread:$0]  %s600_s21, 128, %s796_s4, [#allocation3]  }
 0x14f   :  { %704 = dma.done.wait [#allocation3], 128  }
 0x150   :  { %705 = vsyncadd [#allocation3], 4294967168 }
 0x151   :  { %606 = vsyncpa [#allocation3], 1 }

</bundles_post_ra>
